<compile_context>
chip_gen: v7x
topology: tpu7x:2x2x1
jax: 0.10.0
libtpu: 0.0.40
codegen_flags: <defaults>
</compile_context>

<pallas_src>
import functools

import jax
import jax.numpy as jnp
from jax.experimental import pallas as pl
from jax.experimental.pallas import tpu as pltpu


def _round_up(x, mult):
    return ((x + mult - 1) // mult) * mult


# ----------------------------- Pallas kernel --------------------------------

def ce2d_kernel(logits_ref, targets_ref, weight_ref, num_ref, den_ref, acc_ref,
                *, hw, tm):
    """Process one (C, TM) pixel tile of one batch sample.

    grid = (N, num_tiles): axis 0 ("parallel") is the batch sample, axis 1
    ("arbitrary") streams pixel tiles.  Per-sample partial sums live in a
    (2, 128) VMEM scratch and are flushed to the per-sample output block on the
    last tile; the wrapper does the final cross-lane reduce and the divide.
    """
    i = pl.program_id(1)

    @pl.when(i == 0)
    def _init():
        acc_ref[...] = jnp.zeros_like(acc_ref)

    logits = logits_ref[0].astype(jnp.float32)         # (C, TM)
    tgt = targets_ref[0].astype(jnp.int32)             # (1, TM)
    w = weight_ref[...]                                 # (C, 1) f32

    # Numerically stable log-softmax over the class (sublane) axis.
    mx = jnp.max(logits, axis=0, keepdims=True)                     # (1, TM)
    z = logits - mx                                                  # (C, TM)
    lse = jnp.log(jnp.sum(jnp.exp(z), axis=0, keepdims=True))        # (1, TM)

    # Target pick via sublane-iota one-hot compare (no gather).  Fused select:
    # w[t] * (-log_softmax[t]) and the pixel weight w[t] in one pass each.
    cls = jax.lax.broadcasted_iota(jnp.int32, logits.shape, 0)       # (C, TM)
    onehot = cls == tgt                                              # (C, TM)
    contrib = jnp.sum(jnp.where(onehot, w * (lse - z), 0.0),
                      axis=0, keepdims=True)                         # (1, TM)
    wpix = jnp.sum(jnp.where(onehot, w, 0.0),
                   axis=0, keepdims=True)                            # (1, TM)

    # Lane-validity mask for the ragged tail (the last tile may overrun H*W).
    # Applied with where so garbage in the overrun region never leaks NaN/inf.
    lane = jax.lax.broadcasted_iota(jnp.int32, (1, tm), 1) + i * tm
    valid = lane < hw
    contrib = jnp.where(valid, contrib, 0.0)
    wpix = jnp.where(valid, wpix, 0.0)

    # Lane-parallel accumulation: fold TM lanes down to 128 with cheap sublane
    # adds; defer the expensive cross-lane reduction to the wrapper.
    num_part = jnp.sum(contrib.reshape(tm // 128, 128), axis=0, keepdims=True)  # (1,128)
    den_part = jnp.sum(wpix.reshape(tm // 128, 128), axis=0, keepdims=True)     # (1,128)
    acc_ref[0:1, :] += num_part
    acc_ref[1:2, :] += den_part

    @pl.when(i == pl.num_programs(1) - 1)
    def _finalize():
        num_ref[...] = acc_ref[0:1, :].reshape(num_ref.shape)
        den_ref[...] = acc_ref[1:2, :].reshape(den_ref.shape)


# ------------------------------- Wrapper -------------------------------------

def cross_entropy_loss_2d(outputs, targets, weight=None, *, tile_m=None):
    """CrossEntropyLoss2d.forward: NLLLoss(weight, 'mean')(log_softmax(outputs, 1), targets)."""
    n, c, h, w = outputs.shape
    hw = h * w

    # Free reshapes only (no transpose, no pad): classes stay on sublanes,
    # pixels of one sample go on the lane axis.
    logits = outputs.reshape(n, c, hw)                               # (N, C, HW)

    # Narrow the target dtype for small class counts (HBM bandwidth).
    if c <= 127:
        tgt_dtype = jnp.int8
    elif c <= 32767:
        tgt_dtype = jnp.int16
    else:
        tgt_dtype = jnp.int32
    tgt = targets.reshape(n, 1, hw).astype(tgt_dtype)                # (N, 1, HW)

    if weight is None:
        weight = jnp.ones((c,), dtype=jnp.float32)
    w_col = weight.reshape(c, 1).astype(jnp.float32)

    lbytes = jnp.dtype(logits.dtype).itemsize
    tbytes = jnp.dtype(tgt_dtype).itemsize

    # Tile sizing: ~2 MiB of logits per step (amortizes ~0.35 us per-step
    # overhead), clamped so the double-buffered working set fits comfortably in
    # VMEM on every generation (v7x has 64 MiB / TC, 32 MiB default scoped).
    if tile_m is not None:
        tm = max(128, _round_up(tile_m, 128))
    else:
        target_bytes = 2 * 1024 * 1024
        vmem_budget = 16 * 1024 * 1024
        tm = target_bytes // max(1, c * lbytes)
        tm = min(tm, vmem_budget // (2 * (c * lbytes + tbytes)))
        tm = max(128, (tm // 128) * 128)
    if hw >= 128:
        tm = min(tm, max(128, (hw // 128) * 128))
    else:
        tm = 128
    tiles = pl.cdiv(hw, tm)
    grid = (n, tiles)

    kernel = functools.partial(ce2d_kernel, hw=hw, tm=tm)

    num_out, den_out = pl.pallas_call(
        kernel,
        grid=grid,
        in_specs=[
            pl.BlockSpec((1, c, tm), lambda b, i: (b, 0, i)),    # logits tile
            pl.BlockSpec((1, 1, tm), lambda b, i: (b, 0, i)),    # targets tile
            pl.BlockSpec((c, 1), lambda b, i: (0, 0)),           # class weights (resident)
        ],
        out_specs=[
            pl.BlockSpec((1, 1, 128), lambda b, i: (b, 0, 0)),   # per-sample numerator lanes
            pl.BlockSpec((1, 1, 128), lambda b, i: (b, 0, 0)),   # per-sample denominator lanes
        ],
        out_shape=[
            jax.ShapeDtypeStruct((n, 1, 128), jnp.float32),
            jax.ShapeDtypeStruct((n, 1, 128), jnp.float32),
        ],
        scratch_shapes=[pltpu.VMEM((2, 128), jnp.float32)],
        compiler_params=pltpu.CompilerParams(
            dimension_semantics=("parallel", "arbitrary"),
            vmem_limit_bytes=32 * 1024 * 1024,
        ),
        cost_estimate=pl.CostEstimate(
            flops=6 * n * hw * c,
            transcendentals=n * hw * (c + 1),
            bytes_accessed=n * hw * (c * lbytes + tbytes) + c * 4 + n * 2 * 128 * 4,
        ),
    )(logits, tgt, w_col)

    # Final cross-lane reduce + mean normalization (trivial XLA ops).
    return jnp.sum(num_out) / jnp.sum(den_out)


# ------------------------------ Reference ------------------------------------

def ce2d_reference(outputs, targets, weight=None):
    """Pure-JAX reference matching nn.NLLLoss(weight)(F.log_softmax(x, 1), t)."""
    n, c, h, w = outputs.shape
    logp = jax.nn.log_softmax(outputs.astype(jnp.float32), axis=1)            # (N, C, H, W)
    picked = jnp.take_along_axis(logp, targets[:, None, :, :], axis=1)[:, 0]  # (N, H, W)
    wt = jnp.ones((c,), dtype=jnp.float32) if weight is None else weight.astype(jnp.float32)
    wpix = wt[targets]
    return -jnp.sum(wpix * picked) / jnp.sum(wpix)


# -------------------------------- Main ----------------------------------------

if __name__ == "__main__":
    key = jax.random.PRNGKey(0)
    kx, kt, kw, kx2, kt2, kw2 = jax.random.split(key, 6)

    # Primary config.
    N, C, H, W = 2, 4, 16, 16
    outputs = jax.random.normal(kx, (N, C, H, W), dtype=jnp.float32)
    targets = jax.random.randint(kt, (N, H, W), 0, C, dtype=jnp.int32)
    class_weight = 0.5 + jax.random.uniform(kw, (C,), dtype=jnp.float32)

    loss_w = cross_entropy_loss_2d(outputs, targets, class_weight)              # 1 tile / sample
    loss_s = cross_entropy_loss_2d(outputs, targets, class_weight, tile_m=128)  # streamed, 2 tiles / sample
    loss_u = cross_entropy_loss_2d(outputs, targets, None)                      # unweighted

    # Ragged-tail config (H*W = 144 not a multiple of 128 exercises the validity mask).
    N2, C2, H2, W2 = 2, 3, 12, 12
    outputs2 = jax.random.normal(kx2, (N2, C2, H2, W2), dtype=jnp.float32)
    targets2 = jax.random.randint(kt2, (N2, H2, W2), 0, C2, dtype=jnp.int32)
    class_weight2 = 0.5 + jax.random.uniform(kw2, (C2,), dtype=jnp.float32)
    loss_r = cross_entropy_loss_2d(outputs2, targets2, class_weight2)

    jax.block_until_ready((loss_w, loss_s, loss_u, loss_r))

    ref_w = ce2d_reference(outputs, targets, class_weight)
    ref_u = ce2d_reference(outputs, targets, None)
    ref_r = ce2d_reference(outputs2, targets2, class_weight2)

    assert jnp.allclose(loss_w, ref_w, atol=1e-5, rtol=1e-5), (float(loss_w), float(ref_w))
    assert jnp.allclose(loss_s, ref_w, atol=1e-5, rtol=1e-5), (float(loss_s), float(ref_w))
    assert jnp.allclose(loss_u, ref_u, atol=1e-5, rtol=1e-5), (float(loss_u), float(ref_u))
    assert jnp.allclose(loss_r, ref_r, atol=1e-5, rtol=1e-5), (float(loss_r), float(ref_r))

    print("KERNEL_OK")
</pallas_src>

<mosaic_0001>
module attributes {stable_mosaic.version = 11 : i64} {
  func.func @ce2d_kernel(%arg0: i32, %arg1: i32, %arg2: memref<1x4x256xf32, #tpu.memory_space<vmem>>, %arg3: memref<1x1x256xi8, #tpu.memory_space<vmem>>, %arg4: memref<4x1xf32, #tpu.memory_space<vmem>>, %arg5: memref<1x1x128xf32, #tpu.memory_space<vmem>>, %arg6: memref<1x1x128xf32, #tpu.memory_space<vmem>>, %arg7: memref<2x128xf32, #tpu.memory_space<vmem>>) attributes {dimension_semantics = [#tpu.dimension_semantics<parallel>, #tpu.dimension_semantics<arbitrary>], iteration_bounds = array<i64: 2, 1>, scalar_prefetch = 0 : i64, scratch_operands = 1 : i64, tpu.core_type = #tpu.core_type<tc>, window_params = [{transform_indices = @transform_0, window_bounds = array<i64: 1, 4, 256>}, {transform_indices = @transform_1, window_bounds = array<i64: 1, 1, 256>}, {pipeline_mode = #tpu.pipeline_mode<synchronous>, transform_indices = @transform_2, window_bounds = array<i64: 4, 1>}, {transform_indices = @transform_3, window_bounds = array<i64: 1, 1, 128>}, {transform_indices = @transform_4, window_bounds = array<i64: 1, 1, 128>}]} {
    %c0_i32 = arith.constant 0 : i32
    %0 = arith.cmpi eq, %arg1, %c0_i32 : i32
    %1 = arith.extui %0 : i1 to i32
    %c0_i32_0 = arith.constant 0 : i32
    %2 = arith.cmpi ne, %1, %c0_i32_0 : i32
    scf.if %2 {
      %cst_27 = arith.constant 0.000000e+00 : f32
      %59 = vector.broadcast %cst_27 : f32 to vector<2x128xf32>
      %c0_28 = arith.constant 0 : index
      %c0_29 = arith.constant 0 : index
      %60 = vector.load %arg7[%c0_28, %c0_29] : memref<2x128xf32, #tpu.memory_space<vmem>>, vector<2x128xf32>
      tpu.vector_store %arg7[%c0_28, %c0_29], %59 {strides = array<i32>} : memref<2x128xf32, #tpu.memory_space<vmem>>, vector<2x128xf32>,
    } else {
    }
    %c0 = arith.constant 0 : index
    %c0_1 = arith.constant 0 : index
    %c0_2 = arith.constant 0 : index
    %3 = vector.load %arg2[%c0, %c0_1, %c0_2] : memref<1x4x256xf32, #tpu.memory_space<vmem>>, vector<1x4x256xf32>
    %4 = vector.shape_cast %3 : vector<1x4x256xf32> to vector<4x256xf32>
    %c0_3 = arith.constant 0 : index
    %c0_4 = arith.constant 0 : index
    %c0_5 = arith.constant 0 : index
    %5 = vector.load %arg3[%c0_3, %c0_4, %c0_5] : memref<1x1x256xi8, #tpu.memory_space<vmem>>, vector<1x1x256xi8>
    %6 = vector.shape_cast %5 : vector<1x1x256xi8> to vector<1x256xi8>
    %7 = arith.extsi %6 : vector<1x256xi8> to vector<1x256xi32>
    %c0_6 = arith.constant 0 : index
    %c0_7 = arith.constant 0 : index
    %8 = vector.load %arg4[%c0_6, %c0_7] : memref<4x1xf32, #tpu.memory_space<vmem>>, vector<4x1xf32>
    %cst = arith.constant dense<0xFF800000> : vector<256xf32>
    %9 = vector.multi_reduction <maximumf>, %4, %cst [0] : vector<4x256xf32> to vector<256xf32>
    %10 = vector.shape_cast %9 : vector<256xf32> to vector<1x256xf32>
    %11 = vector.broadcast %10 : vector<1x256xf32> to vector<4x256xf32>
    %12 = arith.subf %4, %11 : vector<4x256xf32>
    %13 = math.exp %12 : vector<4x256xf32>
    %cst_8 = arith.constant dense<0.000000e+00> : vector<256xf32>
    %14 = vector.multi_reduction <add>, %13, %cst_8 [0] : vector<4x256xf32> to vector<256xf32>
    %15 = vector.shape_cast %14 : vector<256xf32> to vector<1x256xf32>
    %16 = math.log %15 : vector<1x256xf32>
    %17 = tpu.iota {dimensions = array<i32: 0>} : vector<4x256xi32>
    %18 = vector.broadcast %7 : vector<1x256xi32> to vector<4x256xi32>
    %19 = arith.cmpi eq, %17, %18 : vector<4x256xi32>
    %20 = vector.broadcast %16 : vector<1x256xf32> to vector<4x256xf32>
    %21 = arith.subf %20, %12 : vector<4x256xf32>
    %22 = vector.broadcast %8 : vector<4x1xf32> to vector<4x256xf32>
    %23 = arith.mulf %22, %21 : vector<4x256xf32>
    %cst_9 = arith.constant 0.000000e+00 : f32
    %24 = vector.broadcast %cst_9 : f32 to vector<4x256xf32>
    %25 = arith.select %19, %23, %24 : vector<4x256xi1>, vector<4x256xf32>
    %cst_10 = arith.constant dense<0.000000e+00> : vector<256xf32>
    %26 = vector.multi_reduction <add>, %25, %cst_10 [0] : vector<4x256xf32> to vector<256xf32>
    %27 = vector.shape_cast %26 : vector<256xf32> to vector<1x256xf32>
    %cst_11 = arith.constant 0.000000e+00 : f32
    %28 = vector.shape_cast %8 : vector<4x1xf32> to vector<4x1xf32>
    %29 = vector.broadcast %28 : vector<4x1xf32> to vector<4x256xf32>
    %30 = vector.broadcast %cst_11 : f32 to vector<4x256xf32>
    %31 = arith.select %19, %29, %30 : vector<4x256xi1>, vector<4x256xf32>
    %cst_12 = arith.constant dense<0.000000e+00> : vector<256xf32>
    %32 = vector.multi_reduction <add>, %31, %cst_12 [0] : vector<4x256xf32> to vector<256xf32>
    %33 = vector.shape_cast %32 : vector<256xf32> to vector<1x256xf32>
    %34 = tpu.iota {dimensions = array<i32: 1>} : vector<1x256xi32>
    %c256_i32 = arith.constant 256 : i32
    %35 = arith.muli %arg1, %c256_i32 : i32
    %36 = vector.broadcast %35 : i32 to vector<1x256xi32>
    %37 = arith.addi %34, %36 : vector<1x256xi32>
    %c256_i32_13 = arith.constant 256 : i32
    %38 = vector.broadcast %c256_i32_13 : i32 to vector<1x256xi32>
    %39 = arith.cmpi slt, %37, %38 : vector<1x256xi32>
    %cst_14 = arith.constant 0.000000e+00 : f32
    %40 = vector.broadcast %cst_14 : f32 to vector<1x256xf32>
    %41 = arith.select %39, %27, %40 : vector<1x256xi1>, vector<1x256xf32>
    %cst_15 = arith.constant 0.000000e+00 : f32
    %42 = vector.broadcast %cst_15 : f32 to vector<1x256xf32>
    %43 = arith.select %39, %33, %42 : vector<1x256xi1>, vector<1x256xf32>
    %44 = vector.shape_cast %41 : vector<1x256xf32> to vector<2x128xf32>
    %cst_16 = arith.constant dense<0.000000e+00> : vector<128xf32>
    %45 = vector.multi_reduction <add>, %44, %cst_16 [0] : vector<2x128xf32> to vector<128xf32>
    %46 = vector.shape_cast %45 : vector<128xf32> to vector<1x128xf32>
    %47 = vector.shape_cast %43 : vector<1x256xf32> to vector<2x128xf32>
    %cst_17 = arith.constant dense<0.000000e+00> : vector<128xf32>
    %48 = vector.multi_reduction <add>, %47, %cst_17 [0] : vector<2x128xf32> to vector<128xf32>
    %49 = vector.shape_cast %48 : vector<128xf32> to vector<1x128xf32>
    %c0_18 = arith.constant 0 : index
    %c0_19 = arith.constant 0 : index
    %50 = vector.load %arg7[%c0_18, %c0_19] : memref<2x128xf32, #tpu.memory_space<vmem>>, vector<1x128xf32>
    %51 = arith.addf %50, %46 : vector<1x128xf32>
    %c0_20 = arith.constant 0 : index
    %c0_21 = arith.constant 0 : index
    %52 = vector.load %arg7[%c0_20, %c0_21] : memref<2x128xf32, #tpu.memory_space<vmem>>, vector<1x128xf32>
    tpu.vector_store %arg7[%c0_20, %c0_21], %51 {strides = array<i32>} : memref<2x128xf32, #tpu.memory_space<vmem>>, vector<1x128xf32>,
    %c1 = arith.constant 1 : index
    %c0_22 = arith.constant 0 : index
    %53 = vector.load %arg7[%c1, %c0_22] : memref<2x128xf32, #tpu.memory_space<vmem>>, vector<1x128xf32>
    %54 = arith.addf %53, %49 : vector<1x128xf32>
    %c1_23 = arith.constant 1 : index
    %c0_24 = arith.constant 0 : index
    %55 = vector.load %arg7[%c1_23, %c0_24] : memref<2x128xf32, #tpu.memory_space<vmem>>, vector<1x128xf32>
    tpu.vector_store %arg7[%c1_23, %c0_24], %54 {strides = array<i32>} : memref<2x128xf32, #tpu.memory_space<vmem>>, vector<1x128xf32>,
    %c0_i32_25 = arith.constant 0 : i32
    %56 = arith.cmpi eq, %arg1, %c0_i32_25 : i32
    %57 = arith.extui %56 : i1 to i32
    %c0_i32_26 = arith.constant 0 : i32
    %58 = arith.cmpi ne, %57, %c0_i32_26 : i32
    scf.if %58 {
      %c0_27 = arith.constant 0 : index
      %c0_28 = arith.constant 0 : index
      %59 = vector.load %arg7[%c0_27, %c0_28] : memref<2x128xf32, #tpu.memory_space<vmem>>, vector<1x128xf32>
      %60 = vector.shape_cast %59 : vector<1x128xf32> to vector<1x1x128xf32>
      %c0_29 = arith.constant 0 : index
      %c0_30 = arith.constant 0 : index
      %c0_31 = arith.constant 0 : index
      %61 = vector.load %arg5[%c0_29, %c0_30, %c0_31] : memref<1x1x128xf32, #tpu.memory_space<vmem>>, vector<1x1x128xf32>
      tpu.vector_store %arg5[%c0_29, %c0_30, %c0_31], %60 {strides = array<i32>} : memref<1x1x128xf32, #tpu.memory_space<vmem>>, vector<1x1x128xf32>,
      %c1_32 = arith.constant 1 : index
      %c0_33 = arith.constant 0 : index
      %62 = vector.load %arg7[%c1_32, %c0_33] : memref<2x128xf32, #tpu.memory_space<vmem>>, vector<1x128xf32>
      %63 = vector.shape_cast %62 : vector<1x128xf32> to vector<1x1x128xf32>
      %c0_34 = arith.constant 0 : index
      %c0_35 = arith.constant 0 : index
      %c0_36 = arith.constant 0 : index
      %64 = vector.load %arg6[%c0_34, %c0_35, %c0_36] : memref<1x1x128xf32, #tpu.memory_space<vmem>>, vector<1x1x128xf32>
      tpu.vector_store %arg6[%c0_34, %c0_35, %c0_36], %63 {strides = array<i32>} : memref<1x1x128xf32, #tpu.memory_space<vmem>>, vector<1x1x128xf32>,
    } else {
    }
    return
  }
  func.func @transform_0(%arg0: i32, %arg1: i32) -> (i32, i32, i32) {
    %c0_i32 = arith.constant 0 : i32
    %c0_i32_0 = arith.constant 0 : i32
    return %arg0, %c0_i32, %arg1 : i32, i32, i32
  }
  func.func @transform_1(%arg0: i32, %arg1: i32) -> (i32, i32, i32) {
    %c0_i32 = arith.constant 0 : i32
    %c0_i32_0 = arith.constant 0 : i32
    return %arg0, %c0_i32, %arg1 : i32, i32, i32
  }
  func.func @transform_2(%arg0: i32, %arg1: i32) -> (i32, i32) {
    %c0_i32 = arith.constant 0 : i32
    %c0_i32_0 = arith.constant 0 : i32
    %c0_i32_1 = arith.constant 0 : i32
    return %c0_i32, %c0_i32_0 : i32, i32
  }
  func.func @transform_3(%arg0: i32, %arg1: i32) -> (i32, i32, i32) {
    %c0_i32 = arith.constant 0 : i32
    %c0_i32_0 = arith.constant 0 : i32
    %c0_i32_1 = arith.constant 0 : i32
    return %arg0, %c0_i32, %c0_i32_0 : i32, i32, i32
  }
  func.func @transform_4(%arg0: i32, %arg1: i32) -> (i32, i32, i32) {
    %c0_i32 = arith.constant 0 : i32
    %c0_i32_0 = arith.constant 0 : i32
    %c0_i32_1 = arith.constant 0 : i32
    return %arg0, %c0_i32, %c0_i32_0 : i32, i32, i32
  }
}

</mosaic_0001>

<bundles_post_ra>
// kernel: tpu_custom_call.1
= control target key start
LH: loop header
LB: loop body
LE: loop exit
PB: predicated region body
PF: predicated region fallthrough
CT: control target
= control target key end

     0   :  { %10 = vsyncpa [#allocation4], 0  ;;  %s1114_s0 = inlined_call_operand.hbm [shape: f32[2,4,256], index: 0, kind: input, shape index: {}]   ;;  %s1115_s1 = inlined_call_operand.vmem [shape: s8[2,1,256], index: 1, kind: input, shape index: {}]   ;;  %s1116_s2 = inlined_call_operand.vmem [shape: f32[4,1], index: 2, kind: input, shape index: {}]   ;;  %s1117_s3 = inlined_call_operand.hbm [shape: f32[2,1,128], index: 3, kind: output, shape index: {0}]   ;;  %s1118_s4 = inlined_call_operand.hbm [shape: f32[2,1,128], index: 4, kind: output, shape index: {1}]  }
   0x1   :  { %12 = vsyncpa [#allocation4 + $0x1], 0 }
   0x2   :  { %13 = vsyncpa [#allocation5], 0 }
   0x3   :  { %15 = vsyncpa [#allocation5 + $0x1], 0 }
   0x4   :  { %16 = vsyncpa [#allocation8], 0 }
   0x5   :  { %18 = vsyncpa [#allocation8 + $0x1], 0  ;;  %s875_s15 = smov 0   ;;  %s877_s16 = smov 0  }
   0x6   :  { %s879_s17 = smov 0   ;;  %s881_s18 = smov 0  }
   0x7   :  { %s883_s19 = smov 0   ;;  %s885_s20 = smov 0  }
   0x8 LB: > { %s605_s21 = sadd.s32 4294967295, %s842_s20   ;;  %s606_s22 = sadd.s32 4294967294, %s842_s20   ;;  %s842_s20 = sphi %s885_s20, %s24_s20   ;;  %s838_s19 = sphi %s883_s19, %s1138_s19   ;;  %s834_s18 = sphi %s881_s18, %s1137_s18   ;;  %s830_s17 = sphi %s879_s17, %s1136_s17   ;;  %s826_s16 = sphi %s877_s16, %s1135_s16   ;;  %s822_s15 = sphi %s875_s15, %s1134_s15  }
   0x9   : > { %s36_s23 = sadd.s32 1, %s838_s19  ;;  %s45_s24 = sadd.s32 1, %s830_s17 }
   0xa   : > { %p38_p0 = scmp.ge.s32.totalorder %s36_s23, 2  ;;  %p52_p1 = scmp.ne.s32.totalorder %s830_s17, %s826_s16 }
   0xb   : > { %p53_p2 = scmp.eq.s32.totalorder %s842_s20, 0  ;;  %p58_p3 = scmp.ne.s32.totalorder %s826_s16, %s822_s15 }
   0xc   : > { %s1140_s23 = smov (%p38_p0, %s36_s23), 0  ;;  %p59_p5 = scmp.eq.s32.totalorder %s605_s21, 0 }
   0xd   : > { %p916_p4 = por %p53_p2, %p52_p1  ;;  %s40_s26 = ssub.s32 %s838_s19, %s1140_s23 }
   0xe   : > { %p131_p6 = scmp.eq.s32.totalorder %s605_s21, 1  ;;  %p43_p7 = scmp.eq.s32.totalorder %s40_s26, 0 }
   0xf   : > { %p922_p8 = por %p59_p5, %p58_p3  ;;  %p137_p10 = scmp.eq.s32.totalorder %s606_s22, 1 }
  0x10   : > { %p926_p9 = por %p131_p6, %p52_p1  ;;  %p637_p13 = scmp.lt.s32.totalorder %s842_s20, 2 }
  0x11   : > { %s931_s29 = scalar_select %p43_p7, %s830_s17, %s45_s24  }
  0x12   : > { %s1122_s28 = scalar_select %p926_p9, 1, 0 }
  0x13   : > { %p933_p11 = por %p137_p10, %p58_p3  ;;  %s186_s5 = sand.u32 1, %s830_s17  }
  0x14   : > { %s609_s6 = sshll.u32 %s186_s5, 3  ;;  %s619_s7 = sshll.u32 %s838_s19, 7 }
  0x15   : > { %s1123_s30 = scalar_select %p933_p11, 1, 0 }
  0x16   : > { %s944_s10 = scalar_lea.hbm %s1114_s0, %s619_s7  ;;  %s190_s11 = scalar_lea.vmem [#allocation3], %s609_s6 }
  0x17   : > { %s200_s12 = sshll.u32 %s190_s11, 4  ;;  %p950_p0 = pnand %p637_p13, %p916_p4  ;;  %s946_s12 = int_to_ptr.vmem [resolvable:$true] %s200_s12 }
  0x18   : > { %s187_s14 = scalar_lea.sflag [#allocation4], %s186_s5  ;;  %s698_s21 = scalar_lea.hbm %s944_s10, 128 }
  0x19   : > { %p699_p3 = scmp.ne.s32.totalorder %s944_s10, %s698_s21  ;;  %p700_p5 = pneg %p950_p0 }
  0x1a   : > { %s703_s25 = scalar_lea.hbm %s1114_s0, 256  ;;  %p704_p4 = scmp.lt.u32.totalorder %s944_s10, %s1114_s0 }
  0x1b   : > { %p701_p6 = pnand %p700_p5, %p699_p3  ;;  %p705_p10 = scmp.lt.u32.totalorder %s703_s25, %s698_s21 }
  0x1c   : > { %p707_p12 = scmp.lt.u32.totalorder %s698_s21, %s944_s10 }
  0x1d   : > { %p702_p7 = pneg %p701_p6  ;;  %p706_p13 = por %p705_p10, %p704_p4 }
  0x1f   : > { %p708_p1 = por %p707_p12, %p706_p13 }
  0x21   : > { %p709_p2 = pnand %p708_p1, %p702_p7 }
  0x23   : > { %712 = shalt.err (!%p709_p2)
}
  0x24   : > { %s713_s5 = scalar_lea.vmem %s946_s12, 128  ;;  %s844_s7 = smov [#allocation3]  }
  0x25   : > { %p714_p3 = scmp.ne.s32.totalorder %s946_s12, %s713_s5  ;;  %s718_s8 = sshll.u32 %s844_s7, 4  ;;  %s719_s8 = int_to_ptr.vmem [resolvable:$false] %s718_s8 }
  0x26   : > { %s720_s9 = scalar_lea.vmem %s719_s8, 256  ;;  %p721_p9 = scmp.lt.s32.totalorder %s946_s12, %s719_s8 }
  0x27   : > { %p716_p6 = pnand %p714_p3, %p700_p5  ;;  %p722_p4 = scmp.lt.s32.totalorder %s720_s9, %s713_s5 }
  0x29   : > { %p717_p11 = pneg %p716_p6  ;;  %p723_p10 = por %p722_p4, %p721_p9 }
  0x2b   : > { %p724_p12 = pnand %p723_p10, %p717_p11 }
  0x2d   : > { %727 = shalt.err (!%p724_p12)
}
  0x2e   : > { %629 = dma.hbm_to_vmem [thread:$0]  (!%p950_p0), %s944_s10, 128, %s946_s12, %s187_s14  }
  0x2f   : > { %p1125_p1 = scmp.lt.s32.totalorder %s842_s20, 3  ;;  %p1126_p2 = scmp.ge.s32.totalorder %s842_s20, 1 }
  0x31   : > { %p218_p5 = pnand %p1126_p2, %p1125_p1 }
  0x32   : > { %s986_s11 = sand.u32 (!%p218_p5), 1, %s826_s16  }
  0x33   : > { %221 = sbr.rel (%p218_p5) target bundleno = 268 (0x10c), region = 32  ;;  %s613_s21 = sshll.u32 (!%p218_p5), %s986_s11, 3 }
  0x34   : > { %s224_s22 = scalar_lea.sflag (!%p218_p5), [#allocation4], %s986_s11  ;;  %s227_s24 = scalar_lea.vmem (!%p218_p5), [#allocation3], %s613_s21 }
  0x3a   : > { %809 = dma.done.wait (%p922_p8), %s224_s22, 128  }
  0x3b   : > { %811 = vsyncadd (%p922_p8), %s224_s22, 4294967168  ;;  %v845_v0 = vmov 0   ;;  %v846_v1 = vmov 0.0   ;;  %v281_v2 = vld [vmem:[%s1116_s2] sm:$0xf]  ;;  %vm285_vm0 = vcmask 1043456   ;;  %v328_v38 = vlaneseq }
  0x3c   : > { %690 = vset.pattern.permute.xlu0 %v845_v0  ;;  %277 = vst [vmem:[#allocation2] sm:$0x3] %v846_v1  ;;  %v278_v3 = vld [vmem:[%s227_s24] sm:$0xff]  ;;  %p265_p8 = scmp.lt.s32.totalorder %s834_s18, 1  ;;  %vm416_vm3 = vcmask 1041408   ;;  %s615_s6 = sshll.u32 %s834_s18, 4 }
  0x3d   : > { %355 = vperm.xlu0 %690, %v281_v2   ;;  %v283_v4 = vcombine.high %v278_v3, %v278_v3  ;;  %v286_v5 = vsel %vm285_vm0, %v278_v3, -inf  ;;  %v329_v39 = vshrl.u32 %v328_v38, 7  ;;  %s262_s5 = scalar_lea.vmem [#allocation7], %s986_s11  ;;  %s256_s8 = scalar_lea.vmem [#allocation6], %s986_s11 }
  0x3e   : > { %v287_v7 = vrot.slane %v286_v5, 4  ;;  %s266_s27 = scalar_select %p265_p8, %s834_s18, 1 }
  0x3f   : > { %v293_v6 = vsel %vm285_vm0, %v283_v4, -inf  ;;  %v332_v41 = vsub.s32 0, %v329_v39  ;;  %v336_v42 = vsub.s32 4, %v329_v39  ;;  %v847_v4 = vmov 1935823168   ;;  %s485_s7 = sshll.u32 %s262_s5, 4  ;;  %s1034_s24 = scalar_lea.hbm %s1118_s4, %s615_s6  ;;  %s1036_s7 = int_to_ptr.vmem [resolvable:$true] %s485_s7 }
  0x40   : > { %v294_v8 = vrot.slane %v293_v6, 4  ;;  %v288_v9 = vmax.f32 %v286_v5, %v287_v7  ;;  %s614_s13 = sshll.u32 %s266_s27, 1  ;;  %v410_v5 = vunpack.c.l.s4 %v847_v4  ;;  %s472_s9 = sshll.u32 %s256_s8, 4  ;;  %s1043_s9 = int_to_ptr.vmem [resolvable:$true] %s472_s9 }
  0x41   : > { %s271_s26 = scalar_lea.vmem %s1115_s1, %s614_s13  ;;  %s1041_s18 = scalar_lea.hbm %s1117_s3, %s615_s6 }
  0x42   : > { %v295_v10 = vmax.f32 %v293_v6, %v294_v8  ;;  %v289_v11 = vrot.slane %v288_v9, 2  ;;  %v279_v40 = vld [vmem:[%s271_s26] sm:$0x3]  ;;  %s460_s27 = scalar_lea.sflag [#allocation8], %s986_s11  ;;  %s728_s13 = scalar_lea.vmem %s1036_s7, 16 }
  0x43   : > { %v280_v43 = vunpack.c.0.s8 %v279_v40  ;;  %p729_p9 = scmp.ne.s32.totalorder %s1036_s7, %s728_s13  ;;  %p1131_p11 = scmp.ne.s32.totalorder %s1122_s28, 0 }
  0x44   : > { %v296_v12 = vrot.slane %v295_v10, 2  ;;  %v290_v13 = vmax.f32 %v288_v9, %v289_v11  ;;  %s848_s14 = smov [#allocation7]  }
  0x45   : > { %v333_v46 = vrot.slane %v280_v43, %v332_v41  ;;  %v337_v47 = vrot.slane %v280_v43, %v336_v42  ;;  %p730_p0 = pnand %p729_p9, %p1131_p11  ;;  %s732_s25 = sshll.u32 %s848_s14, 4  ;;  %s733_s25 = int_to_ptr.vmem [resolvable:$false] %s732_s25 }
  0x46   : > { %v297_v14 = vmax.f32 %v295_v10, %v296_v12  ;;  %v291_v15 = vrot.slane %v290_v13, 1  ;;  %s734_s26 = scalar_lea.vmem %s733_s25, 32  ;;  %p735_p13 = scmp.lt.s32.totalorder %s1036_s7, %s733_s25 }
  0x47   : > { %v341_v51 = vrot.slane %v333_v46, %v332_v41  ;;  %v345_v52 = vrot.slane %v337_v47, %v332_v41  ;;  %v445_v47 = vld [vmem:[#allocation2 + $0x1] sm:$0x1]  ;;  %p731_p7 = pneg %p730_p0  ;;  %p736_p3 = scmp.lt.s32.totalorder %s734_s26, %s728_s13 }
  0x48   : > { %v298_v16 = vrot.slane %v297_v14, 1  ;;  %v292_v17 = vmax.f32 %v290_v13, %v291_v15 }
  0x49   : > { %vm1006_vm1 = vcmp.eq.s32.totalorder %v329_v39, %v341_v51  ;;  %vm1010_vm2 = vcmp.eq.s32.totalorder %v329_v39, %v345_v52  ;;  %p737_p6 = por %p736_p3, %p735_p13 }
  0x4a   : > { %v299_v18 = vmax.f32 %v297_v14, %v298_v16  ;;  %v411_v16 = vunpack.c.0.s8 %v410_v5 }
  0x4b   : > { %p738_p4 = pnand %p737_p6, %p731_p7 }
  0x4c   : > { %v302_v19 = vcombine.low %v292_v17, %v299_v18 }
  0x4e   : > { %v304_v20 = vsub.f32 %v278_v3, %v302_v19 }
  0x50   : > { %v305_v21 = vmul.f32 1.442695, %v304_v20  ;;  %v349_v50 = vcombine.high %v304_v20, %v304_v20 }
  0x52   : > { %692 = vpow2.f32 %v305_v21 }
  0x5c   : > { %v693_v22 = vpop.eup %692 }
  0x5d   : > { %v308_v23 = vcombine.high %v693_v22, %v693_v22  ;;  %v310_v24 = vsel %vm285_vm0, %v693_v22, 0.0 }
  0x5e   : > { %v311_v26 = vrot.slane %v310_v24, 4 }
  0x5f   : > { %v317_v25 = vsel %vm285_vm0, %v308_v23, 0.0 }
  0x60   : > { %v318_v27 = vrot.slane %v317_v25, 4  ;;  %v312_v28 = vadd.f32 %v311_v26, %v310_v24 }
  0x62   : > { %v319_v29 = vadd.f32 %v318_v27, %v317_v25  ;;  %v313_v30 = vrot.slane %v312_v28, 2  ;;  %v414_v25 = vsub.s32 %v411_v16, %v329_v39 }
  0x64   : > { %v320_v31 = vrot.slane %v319_v29, 2  ;;  %v314_v32 = vadd.f32 %v313_v30, %v312_v28 }
  0x66   : > { %v321_v33 = vadd.f32 %v320_v31, %v319_v29  ;;  %v315_v34 = vrot.slane %v314_v32, 1 }
  0x68   : > { %v322_v35 = vrot.slane %v321_v33, 1  ;;  %v316_v36 = vadd.f32 %v315_v34, %v314_v32 }
  0x6a   : > { %v323_v37 = vadd.f32 %v322_v35, %v321_v33  ;;  %694 = vlog2.f32 %v316_v36 }
  0x6c   : > { %696 = vlog2.f32 %v323_v37 }
  0x74   : > { %v695_v44 = vpop.eup %694 }
  0x75   : > { %v325_v48 = vmul.f32 0.6931472, %v695_v44 }
  0x76   : > { %v697_v45 = vpop.eup %696 }
  0x77   : > { %v327_v49 = vmul.f32 0.6931472, %v697_v45  ;;  %v351_v53 = vsub.f32 %v325_v48, %v304_v20 }
  0x79   : > { %v352_v54 = vsub.f32 %v327_v49, %v349_v50  ;;  %v442_v50 = vld [vmem:[#allocation2] sm:$0x1] }
  0xbc   : > { %v356_v57 = vpop.permute.xlu0 %355 }
  0xbd   : > { %v358_v58 = vmul.f32 %v356_v57, %v351_v53  ;;  %v359_v59 = vmul.f32 %v356_v57, %v352_v54  ;;  %v376_v60 = vsel %vm1006_vm1, %v356_v57, 0.0  ;;  %v377_v61 = vsel %vm1010_vm2, %v356_v57, 0.0 }
  0xbe   : > { %v378_v62 = vsel %vm285_vm0, %v376_v60, 0.0  ;;  %v385_v63 = vsel %vm285_vm0, %v377_v61, 0.0 }
  0xbf   : > { %v360_v0 = vsel %vm1006_vm1, %v358_v58, 0.0  ;;  %v361_v1 = vsel %vm1010_vm2, %v359_v59, 0.0  ;;  %v379_v2 = vrot.slane %v378_v62, 4  ;;  %v386_v3 = vrot.slane %v385_v63, 4 }
  0xc0   : > { %v362_v6 = vsel %vm285_vm0, %v360_v0, 0.0  ;;  %v369_v7 = vsel %vm285_vm0, %v361_v1, 0.0 }
  0xc1   : > { %v363_v8 = vrot.slane %v362_v6, 4  ;;  %v370_v9 = vrot.slane %v369_v7, 4  ;;  %v380_v10 = vadd.f32 %v379_v2, %v378_v62  ;;  %v387_v11 = vadd.f32 %v386_v3, %v385_v63 }
  0xc3   : > { %v364_v12 = vadd.f32 %v363_v8, %v362_v6  ;;  %v371_v13 = vadd.f32 %v370_v9, %v369_v7  ;;  %v381_v14 = vrot.slane %v380_v10, 2  ;;  %v388_v15 = vrot.slane %v387_v11, 2 }
  0xc5   : > { %v365_v17 = vrot.slane %v364_v12, 2  ;;  %v372_v18 = vrot.slane %v371_v13, 2  ;;  %v382_v19 = vadd.f32 %v381_v14, %v380_v10  ;;  %v389_v20 = vadd.f32 %v388_v15, %v387_v11 }
  0xc7   : > { %v366_v21 = vadd.f32 %v365_v17, %v364_v12  ;;  %v373_v22 = vadd.f32 %v372_v18, %v371_v13  ;;  %v383_v23 = vrot.slane %v382_v19, 1  ;;  %v390_v24 = vrot.slane %v389_v20, 1 }
  0xc9   : > { %v367_v26 = vrot.slane %v366_v21, 1  ;;  %v374_v27 = vrot.slane %v373_v22, 1  ;;  %v384_v28 = vadd.f32 %v383_v23, %v382_v19  ;;  %v391_v29 = vadd.f32 %v390_v24, %v389_v20 }
  0xcb   : > { %v368_v30 = vadd.f32 %v367_v26, %v366_v21  ;;  %v375_v31 = vadd.f32 %v374_v27, %v373_v22  ;;  %v426_v32 = vcombine.low %v384_v28, %v391_v29 }
  0xcd   : > { %v407_v33 = vcombine.low %v368_v30, %v375_v31  ;;  %v434_v34 = vrot.slane %v426_v32, %v414_v25 }
  0xcf   : > { %v415_v35 = vrot.slane %v407_v33, %v414_v25  ;;  %v435_v36 = vsel %vm416_vm3, %v434_v34, 0.0 }
  0xd0   : > { %v436_v37 = vrot.slane %v435_v36, 4 }
  0xd1   : > { %v417_v38 = vsel %vm416_vm3, %v415_v35, 0.0 }
  0xd2   : > { %v418_v40 = vrot.slane %v417_v38, 4  ;;  %v437_v41 = vadd.f32 %v436_v37, %v435_v36 }
  0xd4   : > { %v419_v42 = vadd.f32 %v418_v40, %v417_v38  ;;  %v438_v39 = vrot.slane %v437_v41, 2 }
  0xd6   : > { %v420_v43 = vrot.slane %v419_v42, 2  ;;  %v439_v44 = vadd.f32 %v438_v39, %v437_v41 }
  0xd8   : > { %v421_v45 = vadd.f32 %v420_v43, %v419_v42  ;;  %v440_v46 = vrot.slane %v439_v44, 1 }
  0xda   : > { %v422_v48 = vrot.slane %v421_v45, 1  ;;  %v441_v49 = vadd.f32 %v440_v46, %v439_v44 }
  0xdc   : > { %v423_v51 = vadd.f32 %v422_v48, %v421_v45  ;;  %v446_v52 = vadd.f32 %v445_v47, %v441_v49 }
  0xde   : > { %v443_v53 = vadd.f32 %v442_v50, %v423_v51  ;;  %447 = vst [vmem:[#allocation2 + $0x1] sm:$0x1] %v446_v52 }
  0xe0   : > { %444 = vst [vmem:[#allocation2] sm:$0x1] %v443_v53 }
  0xe5   : > { %v453_v54 = vld [vmem:[#allocation2 + $0x1] sm:$0x1] }
  0xe6   : > { %454 = vst [vmem:[%s262_s5] sm:$0x1] %v453_v54 }
  0xe7   : > { %v451_v55 = vld [vmem:[#allocation2] sm:$0x1] }
  0xe8   : > { %741 = shalt.err (!%p738_p4)
}
  0xe9   : > { %s742_s6 = scalar_lea.hbm %s1034_s24, 16  ;;  %s746_s22 = scalar_lea.hbm %s1118_s4, 32 }
  0xea   : > { %p743_p10 = scmp.ne.s32.totalorder %s1034_s24, %s742_s6  ;;  %p747_p2 = scmp.lt.u32.totalorder %s1034_s24, %s1118_s4 }
  0xeb   : > { %p748_p5 = scmp.lt.u32.totalorder %s746_s22, %s742_s6  ;;  %p750_p9 = scmp.lt.u32.totalorder %s742_s6, %s1034_s24 }
  0xec   : > { %p744_p12 = pnand %p743_p10, %p1131_p11 }
  0xed   : > { %p749_p8 = por %p748_p5, %p747_p2 }
  0xee   : > { %p745_p1 = pneg %p744_p12 }
  0xef   : > { %p751_p0 = por %p750_p9, %p749_p8 }
  0xf1   : > { %p752_p7 = pnand %p751_p0, %p745_p1 }
  0xf3   : > { %755 = shalt.err (!%p752_p7)
}
  0xf4   : > { %623 = dma.vmem_to_hbm [thread:$0]  (%p1131_p11), %s1036_s7, 16, %s1034_s24, %s460_s27   ;;  %452 = vst [vmem:[%s256_s8] sm:$0x1] %v451_v55 }
  0xf5   : > { %s456_s13 = scalar_lea.sflag [#allocation5], %s986_s11  ;;  %s756_s14 = scalar_lea.vmem %s1043_s9, 16 }
  0xf6   : > { %p757_p13 = scmp.ne.s32.totalorder %s1043_s9, %s756_s14  ;;  %s849_s25 = smov [#allocation6]  }
  0xf7   : > { %s760_s26 = sshll.u32 %s849_s25, 4  ;;  %s761_s26 = int_to_ptr.vmem [resolvable:$false] %s760_s26 }
  0xf8   : > { %p758_p3 = pnand %p757_p13, %p1131_p11  ;;  %s762_s6 = scalar_lea.vmem %s761_s26, 32 }
  0xf9   : > { %p763_p4 = scmp.lt.s32.totalorder %s1043_s9, %s761_s26  ;;  %p764_p10 = scmp.lt.s32.totalorder %s762_s6, %s756_s14 }
  0xfa   : > { %p759_p6 = pneg %p758_p3 }
  0xfb   : > { %p765_p12 = por %p764_p10, %p763_p4 }
  0xfd   : > { %p766_p1 = pnand %p765_p12, %p759_p6 }
  0xff   : > { %769 = shalt.err (!%p766_p1)
}
 0x100   : > { %s770_s11 = scalar_lea.hbm %s1041_s18, 16  ;;  %s774_s24 = scalar_lea.hbm %s1117_s3, 32 }
 0x101   : > { %p771_p2 = scmp.ne.s32.totalorder %s1041_s18, %s770_s11  ;;  %p775_p9 = scmp.lt.u32.totalorder %s1041_s18, %s1117_s3 }
 0x102   : > { %p776_p0 = scmp.lt.u32.totalorder %s774_s24, %s770_s11  ;;  %p778_p13 = scmp.lt.u32.totalorder %s770_s11, %s1041_s18 }
 0x103   : > { %p772_p5 = pnand %p771_p2, %p1131_p11 }
 0x104   : > { %p777_p7 = por %p776_p0, %p775_p9 }
 0x105   : > { %p773_p8 = pneg %p772_p5 }
 0x106   : > { %p779_p3 = por %p778_p13, %p777_p7 }
 0x108   : > { %p780_p6 = pnand %p779_p3, %p773_p8 }
 0x10a   : > { %783 = shalt.err (!%p780_p6)
}
 0x10b   : > { %622 = dma.vmem_to_hbm [thread:$0]  (%p1131_p11), %s1043_s9, 16, %s1041_s18, %s456_s13  }
 0x10c PF: > { %s497_s21 = sand.u32 1, %s822_s15   ;;  %p1132_p4 = scmp.ne.s32.totalorder %s1123_s30, 0 }
 0x10d   : > { %p1133_p10 = scmp.ge.s32.totalorder %s842_s20, 2  ;;  %s498_s22 = scalar_lea.sflag [#allocation5], %s497_s21 }
 0x10f   : > { %p631_p12 = pnand %p1133_p10, %p1132_p4 }
 0x111   : > { %813 = dma.done.wait (!%p631_p12), %s498_s22, 16  }
 0x112   : > { %815 = vsyncadd (!%p631_p12), %s498_s22, 4294967280  ;;  %s506_s10 = scalar_lea.sflag [#allocation8], %s497_s21 }
 0x113   : > { %817 = dma.done.wait (!%p631_p12), %s506_s10, 16  }
 0x114   : > { %819 = vsyncadd (!%p631_p12), %s506_s10, 4294967280  ;;  %s24_s20 = sadd.s32 1, %s842_s20   ;;  %s1134_s15 = smov %s826_s16 }
 0x115   : > { %p21_p1 = scmp.ge.s32.totalorder %s24_s20, 4   ;;  %s1135_s16 = smov %s830_s17 }
 0x116   : > { %s1136_s17 = smov %s931_s29  ;;  %s1137_s18 = smov %s838_s19 }
 0x117   : > { %s1138_s19 = smov %s1140_s23  ;;  %23 = sbr.rel (!%p21_p1) target bundleno = 8 (0x8), region = 105 }
 0x11e   :  { %510 = vsyncpa [#allocation4], 1 }
 0x11f   :  { %512 = vsyncpa [#allocation4 + $0x1], 1 }
 0x120   :  { %513 = vsyncpa [#allocation5], 1 }
 0x121   :  { %515 = vsyncpa [#allocation5 + $0x1], 1 }
 0x122   :  { %516 = vsyncpa [#allocation8], 1 }
 0x123   :  { %518 = vsyncpa [#allocation8 + $0x1], 1 }

</bundles_post_ra>
